<compile_context>
chip_gen: v6e
topology: v6e:2x2x1
jax: 0.10.0
libtpu: 0.0.40
codegen_flags: <defaults>
</compile_context>

<pallas_src>
import math

import jax
import jax.numpy as jnp
from jax.experimental import pallas as pl
from jax.experimental.pallas import tpu as pltpu

# ----------------------------- model dims -----------------------------------
B = 2          # batch
S = 8          # sequence length
H = 32         # hidden size (d_model)
NHEAD = 4      # attention heads
DK = H // NHEAD
FF = 4 * H     # feed-forward hidden
EPS = 1e-6
GELU_C = math.sqrt(2.0 / math.pi)
ATTN_SCALE = 1.0 / math.sqrt(DK)


# ----------------------------- Pallas kernel --------------------------------
def transformer_block_kernel(
    x_ref, bias_ref,
    wqkv_ref, wo_ref, w1_ref, w2_ref,
    vec_ref,
    out_ref,
):
    BB = x_ref.shape[0]                       # batch rows handled by this step
    M = BB * S

    # (BB, S, H) -> (BB*S, H): merges leading dims only (S == sublane tile),
    # layout-preserving; doubles the matmul M dim vs. per-batch grid steps.
    x = x_ref[...].astype(jnp.float32).reshape(M, H)
    bias = bias_ref[...]                      # (BB, S, S) additive f32 mask

    # Packed vector params: one (8, FF) slab, sliced by row.
    vec = vec_ref[...]
    bqkv = vec[0:1, :3 * H]                   # (1, 3H)
    bo   = vec[1:2, :H]
    b1   = vec[2:3, :FF]
    b2   = vec[3:4, :H]
    g1   = vec[4:5, :H]
    be1  = vec[5:6, :H]
    g2   = vec[6:7, :H]
    be2  = vec[7:8, :H]

    def layer_norm(v, gamma, beta):
        # Matches the hand-rolled module: Bessel-corrected std (ddof=1) and
        # eps added OUTSIDE the sqrt (std + eps).
        mean = jnp.mean(v, axis=-1, keepdims=True)
        var = jnp.sum((v - mean) ** 2, axis=-1, keepdims=True) * (1.0 / (H - 1))
        inv = pl.reciprocal(jnp.sqrt(var) + EPS, approx=False)
        return gamma * (v - mean) * inv + beta

    def gelu(v):
        return 0.5 * v * (1.0 + jnp.tanh(GELU_C * (v + 0.044715 * v * v * v)))

    # ------------------ sublayer 1: multi-head self-attention ---------------
    xn = layer_norm(x, g1, be1)                                        # (M, H)
    qkv = jnp.dot(xn, wqkv_ref[...],
                  preferred_element_type=jnp.float32) + bqkv           # (M, 3H)

    head_outs = []
    for h in range(NHEAD):                                             # static
        qh = qkv[:, h * DK:(h + 1) * DK].reshape(BB, S, DK)
        kh = qkv[:, H + h * DK:H + (h + 1) * DK].reshape(BB, S, DK)
        vh = qkv[:, 2 * H + h * DK:2 * H + (h + 1) * DK].reshape(BB, S, DK)
        s = jnp.einsum('bqd,bkd->bqk', qh, kh,
                       preferred_element_type=jnp.float32)             # (BB,S,S)
        s = s * ATTN_SCALE + bias                                      # masked
        s = s - jnp.max(s, axis=-1, keepdims=True)                     # stable
        p = jnp.exp(s)
        p = p * pl.reciprocal(jnp.sum(p, axis=-1, keepdims=True), approx=False)
        head_outs.append(jnp.einsum('bqk,bkd->bqd', p, vh,
                                    preferred_element_type=jnp.float32))
    attn = jnp.concatenate(head_outs, axis=-1).reshape(M, H)           # (M, H)
    attn = jnp.dot(attn, wo_ref[...],
                   preferred_element_type=jnp.float32) + bo
    x1 = x + attn                                                      # residual 1

    # ------------------ sublayer 2: position-wise FFN -----------------------
    xn2 = layer_norm(x1, g2, be2)
    hmid = gelu(jnp.dot(xn2, w1_ref[...],
                        preferred_element_type=jnp.float32) + b1)
    ffn = jnp.dot(hmid, w2_ref[...],
                  preferred_element_type=jnp.float32) + b2
    y = x1 + ffn                                                       # residual 2

    # TODO(synk): dropout layers are identity (eval mode); no stochastic masking.
    out_ref[...] = y.reshape(BB, S, H).astype(out_ref.dtype)


# ----------------------------- wrapper ---------------------------------------
def _batch_block_size():
    """Batch rows per grid step: fold the batch on 1-TC chips (v5e/v6e),
    keep one batch per step on dual-TC v7x so the parallel axis spans cores."""
    try:
        kind = jax.devices()[0].device_kind.lower()
    except Exception:
        kind = ""
    if "7" in kind and B > 1:
        return 1
    return B


def transformer_block(x, mask, params):
    (wq, bq, wk, bk, wv, bv, wo, bo, w1, b1, w2, b2, g1, be1, g2, be2) = params

    # Fused QKV weight (H, 3H) and one packed (8, FF) slab for all small vectors.
    wqkv = jnp.concatenate([wq, wk, wv], axis=1)
    vec = jnp.zeros((8, FF), jnp.float32)
    vec = vec.at[0, :3 * H].set(jnp.concatenate([bq[0], bk[0], bv[0]]))
    vec = vec.at[1, :H].set(bo[0])
    vec = vec.at[2, :FF].set(b1[0])
    vec = vec.at[3, :H].set(b2[0])
    vec = vec.at[4, :H].set(g1[0])
    vec = vec.at[5, :H].set(be1[0])
    vec = vec.at[6, :H].set(g2[0])
    vec = vec.at[7, :H].set(be2[0])

    # Additive f32 mask bias: 0 where attend, -1e9 where masked.
    bias = (-1e9) * (1.0 - mask.astype(jnp.float32))

    BB = _batch_block_size()
    grid = (B // BB,)

    full = lambda shape: pl.BlockSpec(shape, lambda i: tuple(0 for _ in shape))
    in_specs = [
        pl.BlockSpec((BB, S, H), lambda i: (i, 0, 0)),   # x
        pl.BlockSpec((BB, S, S), lambda i: (i, 0, 0)),   # mask bias
        full((H, 3 * H)),                                # wqkv
        full((H, H)),                                    # wo
        full((H, FF)),                                   # w1
        full((FF, H)),                                   # w2
        full((8, FF)),                                   # packed vectors
    ]
    out_spec = pl.BlockSpec((BB, S, H), lambda i: (i, 0, 0))

    # Total VMEM footprint < 100 KiB; no vmem_limit_bytes needed on any gen.
    return pl.pallas_call(
        transformer_block_kernel,
        out_shape=jax.ShapeDtypeStruct((B, S, H), jnp.float32),
        grid_spec=pltpu.PrefetchScalarGridSpec(
            num_scalar_prefetch=0,
            grid=grid,
            in_specs=in_specs,
            out_specs=out_spec,
        ),
        compiler_params=pltpu.CompilerParams(
            dimension_semantics=("parallel",)),
    )(x, bias, wqkv, wo, w1, w2, vec)


# ----------------------------- pure-JAX reference ----------------------------
def reference(x, mask, params):
    (wq, bq, wk, bk, wv, bv, wo, bo, w1, b1, w2, b2, g1, be1, g2, be2) = params

    def ln(v, g, b):
        m = jnp.mean(v, axis=-1, keepdims=True)
        std = jnp.sqrt(jnp.sum((v - m) ** 2, axis=-1, keepdims=True) / (H - 1))
        return g * (v - m) / (std + EPS) + b

    def gelu(v):
        return 0.5 * v * (1.0 + jnp.tanh(GELU_C * (v + 0.044715 * v ** 3)))

    xn = ln(x, g1, be1)
    q = xn @ wq + bq
    k = xn @ wk + bk
    v = xn @ wv + bv
    q = q.reshape(B, S, NHEAD, DK).transpose(0, 2, 1, 3)
    k = k.reshape(B, S, NHEAD, DK).transpose(0, 2, 1, 3)
    v = v.reshape(B, S, NHEAD, DK).transpose(0, 2, 1, 3)
    scores = jnp.einsum("bhqd,bhkd->bhqk", q, k) / math.sqrt(DK)
    scores = jnp.where(mask[:, None, :, :] == 0, -1e9, scores)
    p = jax.nn.softmax(scores, axis=-1)
    attn = jnp.einsum("bhqk,bhkd->bhqd", p, v).transpose(0, 2, 1, 3).reshape(B, S, H)
    x1 = x + (attn @ wo + bo)
    xn2 = ln(x1, g2, be2)
    ffn = gelu(xn2 @ w1 + b1) @ w2 + b2
    return x1 + ffn


# ----------------------------- main ------------------------------------------
if __name__ == "__main__":
    key = jax.random.PRNGKey(0)
    keys = jax.random.split(key, 16)

    def lin(k, fan_in, fan_out):
        # deterministic "nn.Linear"-style init; weight stored as (in, out)
        bound = 1.0 / math.sqrt(fan_in)
        kw, kb = jax.random.split(k)
        w = jax.random.uniform(kw, (fan_in, fan_out), jnp.float32, -bound, bound)
        b = jax.random.uniform(kb, (1, fan_out), jnp.float32, -bound, bound)
        return w, b

    wq, bq = lin(keys[0], H, H)
    wk, bk = lin(keys[1], H, H)
    wv, bv = lin(keys[2], H, H)
    wo, bo = lin(keys[3], H, H)
    w1, b1 = lin(keys[4], H, FF)
    w2, b2 = lin(keys[5], FF, H)
    g1 = jnp.ones((1, H), jnp.float32)
    be1 = jnp.zeros((1, H), jnp.float32)
    g2 = jnp.ones((1, H), jnp.float32)
    be2 = jnp.zeros((1, H), jnp.float32)
    params = (wq, bq, wk, bk, wv, bv, wo, bo, w1, b1, w2, b2, g1, be1, g2, be2)

    x = jax.random.normal(keys[6], (B, S, H), jnp.float32)
    # padding-style mask: 1 = attend, 0 = masked (last 2 key positions of batch 1 masked)
    mask = jnp.ones((B, S, S), jnp.int32)
    mask = mask.at[1, :, S - 2:].set(0)

    out = transformer_block(x, mask, params)
    out = jax.block_until_ready(out)

    ref = reference(x, mask, params)
    assert out.shape == (B, S, H)
    assert jnp.allclose(out, ref, atol=2e-4, rtol=2e-4), "mismatch vs reference"

    print("KERNEL_OK")
</pallas_src>

<mosaic_0001>
module attributes {stable_mosaic.version = 11 : i64} {
  func.func @transformer_block_kernel(%arg0: i32, %arg1: memref<2x8x32xf32, #tpu.memory_space<vmem>>, %arg2: memref<2x8x8xf32, #tpu.memory_space<vmem>>, %arg3: memref<32x96xf32, #tpu.memory_space<vmem>>, %arg4: memref<32x32xf32, #tpu.memory_space<vmem>>, %arg5: memref<32x128xf32, #tpu.memory_space<vmem>>, %arg6: memref<128x32xf32, #tpu.memory_space<vmem>>, %arg7: memref<8x128xf32, #tpu.memory_space<vmem>>, %arg8: memref<2x8x32xf32, #tpu.memory_space<vmem>>) attributes {dimension_semantics = [#tpu.dimension_semantics<parallel>], iteration_bounds = array<i64: 1>, scalar_prefetch = 0 : i64, scratch_operands = 0 : i64, tpu.core_type = #tpu.core_type<tc>, window_params = [{transform_indices = @transform_0, window_bounds = array<i64: 2, 8, 32>}, {transform_indices = @transform_1, window_bounds = array<i64: 2, 8, 8>}, {pipeline_mode = #tpu.pipeline_mode<synchronous>, transform_indices = @transform_2, window_bounds = array<i64: 32, 96>}, {pipeline_mode = #tpu.pipeline_mode<synchronous>, transform_indices = @transform_3, window_bounds = array<i64: 32, 32>}, {pipeline_mode = #tpu.pipeline_mode<synchronous>, transform_indices = @transform_4, window_bounds = array<i64: 32, 128>}, {pipeline_mode = #tpu.pipeline_mode<synchronous>, transform_indices = @transform_5, window_bounds = array<i64: 128, 32>}, {pipeline_mode = #tpu.pipeline_mode<synchronous>, transform_indices = @transform_6, window_bounds = array<i64: 8, 128>}, {transform_indices = @transform_7, window_bounds = array<i64: 2, 8, 32>}]} {
    %c0 = arith.constant 0 : index
    %c0_0 = arith.constant 0 : index
    %c0_1 = arith.constant 0 : index
    %0 = vector.load %arg1[%c0, %c0_0, %c0_1] : memref<2x8x32xf32, #tpu.memory_space<vmem>>, vector<2x8x32xf32>
    %1 = vector.shape_cast %0 : vector<2x8x32xf32> to vector<16x32xf32>
    %c0_2 = arith.constant 0 : index
    %c0_3 = arith.constant 0 : index
    %c0_4 = arith.constant 0 : index
    %2 = vector.load %arg2[%c0_2, %c0_3, %c0_4] : memref<2x8x8xf32, #tpu.memory_space<vmem>>, vector<2x8x8xf32>
    %c0_5 = arith.constant 0 : index
    %c0_6 = arith.constant 0 : index
    %3 = vector.load %arg7[%c0_5, %c0_6] : memref<8x128xf32, #tpu.memory_space<vmem>>, vector<8x128xf32>
    %4 = vector.extract_strided_slice %3 {offsets = [0, 0], sizes = [1, 96], strides = [1, 1]} : vector<8x128xf32> to vector<1x96xf32>
    %5 = vector.extract_strided_slice %3 {offsets = [1, 0], sizes = [1, 32], strides = [1, 1]} : vector<8x128xf32> to vector<1x32xf32>
    %6 = vector.extract_strided_slice %3 {offsets = [2, 0], sizes = [1, 128], strides = [1, 1]} : vector<8x128xf32> to vector<1x128xf32>
    %7 = vector.extract_strided_slice %3 {offsets = [3, 0], sizes = [1, 32], strides = [1, 1]} : vector<8x128xf32> to vector<1x32xf32>
    %8 = vector.extract_strided_slice %3 {offsets = [4, 0], sizes = [1, 32], strides = [1, 1]} : vector<8x128xf32> to vector<1x32xf32>
    %9 = vector.extract_strided_slice %3 {offsets = [5, 0], sizes = [1, 32], strides = [1, 1]} : vector<8x128xf32> to vector<1x32xf32>
    %10 = vector.extract_strided_slice %3 {offsets = [6, 0], sizes = [1, 32], strides = [1, 1]} : vector<8x128xf32> to vector<1x32xf32>
    %11 = vector.extract_strided_slice %3 {offsets = [7, 0], sizes = [1, 32], strides = [1, 1]} : vector<8x128xf32> to vector<1x32xf32>
    %cst = arith.constant dense<0.000000e+00> : vector<16xf32>
    %12 = vector.multi_reduction <add>, %1, %cst [1] : vector<16x32xf32> to vector<16xf32>
    %13 = vector.shape_cast %12 : vector<16xf32> to vector<16x1xf32>
    %cst_7 = arith.constant 3.200000e+01 : f32
    %14 = vector.broadcast %cst_7 : f32 to vector<16x1xf32>
    %15 = arith.divf %13, %14 : vector<16x1xf32>
    %16 = vector.broadcast %15 : vector<16x1xf32> to vector<16x32xf32>
    %17 = arith.subf %1, %16 : vector<16x32xf32>
    %18 = arith.mulf %17, %17 : vector<16x32xf32>
    %cst_8 = arith.constant dense<0.000000e+00> : vector<16xf32>
    %19 = vector.multi_reduction <add>, %18, %cst_8 [1] : vector<16x32xf32> to vector<16xf32>
    %20 = vector.shape_cast %19 : vector<16xf32> to vector<16x1xf32>
    %cst_9 = arith.constant 0.0322580636 : f32
    %21 = vector.broadcast %cst_9 : f32 to vector<16x1xf32>
    %22 = arith.mulf %20, %21 : vector<16x1xf32>
    %23 = math.sqrt %22 : vector<16x1xf32>
    %cst_10 = arith.constant 9.99999997E-7 : f32
    %24 = vector.broadcast %cst_10 : f32 to vector<16x1xf32>
    %25 = arith.addf %23, %24 : vector<16x1xf32>
    %26 = tpu.reciprocal %25 : vector<16x1xf32> -> vector<16x1xf32>
    %27 = vector.broadcast %15 : vector<16x1xf32> to vector<16x32xf32>
    %28 = arith.subf %1, %27 : vector<16x32xf32>
    %29 = vector.broadcast %8 : vector<1x32xf32> to vector<16x32xf32>
    %30 = arith.mulf %29, %28 : vector<16x32xf32>
    %31 = vector.broadcast %26 : vector<16x1xf32> to vector<16x32xf32>
    %32 = arith.mulf %30, %31 : vector<16x32xf32>
    %33 = vector.broadcast %9 : vector<1x32xf32> to vector<16x32xf32>
    %34 = arith.addf %32, %33 : vector<16x32xf32>
    %c0_11 = arith.constant 0 : index
    %c0_12 = arith.constant 0 : index
    %35 = vector.load %arg3[%c0_11, %c0_12] : memref<32x96xf32, #tpu.memory_space<vmem>>, vector<32x96xf32>
    %cst_13 = arith.constant dense<0.000000e+00> : vector<16x96xf32>
    %36 = tpu.matmul %34, %35, %cst_13 {dimension_numbers = #tpu.dot_dimension_numbers<[1], [0], [0], [1], [0, 0, 1, 1], [], []>} : vector<16x32xf32>, vector<32x96xf32>, vector<16x96xf32> -> vector<16x96xf32>
    %37 = vector.broadcast %4 : vector<1x96xf32> to vector<16x96xf32>
    %38 = arith.addf %36, %37 : vector<16x96xf32>
    %39 = vector.extract_strided_slice %38 {offsets = [0, 0], sizes = [16, 8], strides = [1, 1]} : vector<16x96xf32> to vector<16x8xf32>
    %40 = vector.shape_cast %39 : vector<16x8xf32> to vector<2x8x8xf32>
    %41 = vector.extract_strided_slice %38 {offsets = [0, 32], sizes = [16, 8], strides = [1, 1]} : vector<16x96xf32> to vector<16x8xf32>
    %42 = vector.shape_cast %41 : vector<16x8xf32> to vector<2x8x8xf32>
    %43 = vector.extract_strided_slice %38 {offsets = [0, 64], sizes = [16, 8], strides = [1, 1]} : vector<16x96xf32> to vector<16x8xf32>
    %44 = vector.shape_cast %43 : vector<16x8xf32> to vector<2x8x8xf32>
    "tpu.trace_start"() <{level = 10 : i32, message = "bqd,bkd->bqk"}> : () -> ()
    %cst_14 = arith.constant dense<0.000000e+00> : vector<2x8x8xf32>
    %45 = tpu.matmul %40, %42, %cst_14 {dimension_numbers = #tpu.dot_dimension_numbers<[2], [2], [1], [1], [0, 0, 0, 1, 1, 1], [0], [0]>} : vector<2x8x8xf32>, vector<2x8x8xf32>, vector<2x8x8xf32> -> vector<2x8x8xf32>
    "tpu.trace_stop"() : () -> ()
    %cst_15 = arith.constant 0.353553385 : f32
    %46 = vector.broadcast %cst_15 : f32 to vector<2x8x8xf32>
    %47 = arith.mulf %45, %46 : vector<2x8x8xf32>
    %48 = arith.addf %47, %2 : vector<2x8x8xf32>
    %cst_16 = arith.constant dense<0xFF800000> : vector<2x8xf32>
    %49 = vector.multi_reduction <maximumf>, %48, %cst_16 [2] : vector<2x8x8xf32> to vector<2x8xf32>
    %50 = vector.shape_cast %49 : vector<2x8xf32> to vector<2x8x1xf32>
    %51 = vector.broadcast %50 : vector<2x8x1xf32> to vector<2x8x8xf32>
    %52 = arith.subf %48, %51 : vector<2x8x8xf32>
    %53 = math.exp %52 : vector<2x8x8xf32>
    %cst_17 = arith.constant dense<0.000000e+00> : vector<2x8xf32>
    %54 = vector.multi_reduction <add>, %53, %cst_17 [2] : vector<2x8x8xf32> to vector<2x8xf32>
    %55 = vector.shape_cast %54 : vector<2x8xf32> to vector<2x8x1xf32>
    %56 = tpu.reciprocal %55 : vector<2x8x1xf32> -> vector<2x8x1xf32>
    %57 = vector.broadcast %56 : vector<2x8x1xf32> to vector<2x8x8xf32>
    %58 = arith.mulf %53, %57 : vector<2x8x8xf32>
    "tpu.trace_start"() <{level = 10 : i32, message = "bqk,bkd->bqd"}> : () -> ()
    %cst_18 = arith.constant dense<0.000000e+00> : vector<2x8x8xf32>
    %59 = tpu.matmul %58, %44, %cst_18 {dimension_numbers = #tpu.dot_dimension_numbers<[2], [1], [1], [2], [0, 0, 0, 1, 1, 2], [0], [0]>} : vector<2x8x8xf32>, vector<2x8x8xf32>, vector<2x8x8xf32> -> vector<2x8x8xf32>
    "tpu.trace_stop"() : () -> ()
    %60 = vector.extract_strided_slice %38 {offsets = [0, 8], sizes = [16, 8], strides = [1, 1]} : vector<16x96xf32> to vector<16x8xf32>
    %61 = vector.shape_cast %60 : vector<16x8xf32> to vector<2x8x8xf32>
    %62 = vector.extract_strided_slice %38 {offsets = [0, 40], sizes = [16, 8], strides = [1, 1]} : vector<16x96xf32> to vector<16x8xf32>
    %63 = vector.shape_cast %62 : vector<16x8xf32> to vector<2x8x8xf32>
    %64 = vector.extract_strided_slice %38 {offsets = [0, 72], sizes = [16, 8], strides = [1, 1]} : vector<16x96xf32> to vector<16x8xf32>
    %65 = vector.shape_cast %64 : vector<16x8xf32> to vector<2x8x8xf32>
    "tpu.trace_start"() <{level = 10 : i32, message = "bqd,bkd->bqk"}> : () -> ()
    %cst_19 = arith.constant dense<0.000000e+00> : vector<2x8x8xf32>
    %66 = tpu.matmul %61, %63, %cst_19 {dimension_numbers = #tpu.dot_dimension_numbers<[2], [2], [1], [1], [0, 0, 0, 1, 1, 1], [0], [0]>} : vector<2x8x8xf32>, vector<2x8x8xf32>, vector<2x8x8xf32> -> vector<2x8x8xf32>
    "tpu.trace_stop"() : () -> ()
    %cst_20 = arith.constant 0.353553385 : f32
    %67 = vector.broadcast %cst_20 : f32 to vector<2x8x8xf32>
    %68 = arith.mulf %66, %67 : vector<2x8x8xf32>
    %69 = arith.addf %68, %2 : vector<2x8x8xf32>
    %cst_21 = arith.constant dense<0xFF800000> : vector<2x8xf32>
    %70 = vector.multi_reduction <maximumf>, %69, %cst_21 [2] : vector<2x8x8xf32> to vector<2x8xf32>
    %71 = vector.shape_cast %70 : vector<2x8xf32> to vector<2x8x1xf32>
    %72 = vector.broadcast %71 : vector<2x8x1xf32> to vector<2x8x8xf32>
    %73 = arith.subf %69, %72 : vector<2x8x8xf32>
    %74 = math.exp %73 : vector<2x8x8xf32>
    %cst_22 = arith.constant dense<0.000000e+00> : vector<2x8xf32>
    %75 = vector.multi_reduction <add>, %74, %cst_22 [2] : vector<2x8x8xf32> to vector<2x8xf32>
    %76 = vector.shape_cast %75 : vector<2x8xf32> to vector<2x8x1xf32>
    %77 = tpu.reciprocal %76 : vector<2x8x1xf32> -> vector<2x8x1xf32>
    %78 = vector.broadcast %77 : vector<2x8x1xf32> to vector<2x8x8xf32>
    %79 = arith.mulf %74, %78 : vector<2x8x8xf32>
    "tpu.trace_start"() <{level = 10 : i32, message = "bqk,bkd->bqd"}> : () -> ()
    %cst_23 = arith.constant dense<0.000000e+00> : vector<2x8x8xf32>
    %80 = tpu.matmul %79, %65, %cst_23 {dimension_numbers = #tpu.dot_dimension_numbers<[2], [1], [1], [2], [0, 0, 0, 1, 1, 2], [0], [0]>} : vector<2x8x8xf32>, vector<2x8x8xf32>, vector<2x8x8xf32> -> vector<2x8x8xf32>
    "tpu.trace_stop"() : () -> ()
    %81 = vector.extract_strided_slice %38 {offsets = [0, 16], sizes = [16, 8], strides = [1, 1]} : vector<16x96xf32> to vector<16x8xf32>
    %82 = vector.shape_cast %81 : vector<16x8xf32> to vector<2x8x8xf32>
    %83 = vector.extract_strided_slice %38 {offsets = [0, 48], sizes = [16, 8], strides = [1, 1]} : vector<16x96xf32> to vector<16x8xf32>
    %84 = vector.shape_cast %83 : vector<16x8xf32> to vector<2x8x8xf32>
    %85 = vector.extract_strided_slice %38 {offsets = [0, 80], sizes = [16, 8], strides = [1, 1]} : vector<16x96xf32> to vector<16x8xf32>
    %86 = vector.shape_cast %85 : vector<16x8xf32> to vector<2x8x8xf32>
    "tpu.trace_start"() <{level = 10 : i32, message = "bqd,bkd->bqk"}> : () -> ()
    %cst_24 = arith.constant dense<0.000000e+00> : vector<2x8x8xf32>
    %87 = tpu.matmul %82, %84, %cst_24 {dimension_numbers = #tpu.dot_dimension_numbers<[2], [2], [1], [1], [0, 0, 0, 1, 1, 1], [0], [0]>} : vector<2x8x8xf32>, vector<2x8x8xf32>, vector<2x8x8xf32> -> vector<2x8x8xf32>
    "tpu.trace_stop"() : () -> ()
    %cst_25 = arith.constant 0.353553385 : f32
    %88 = vector.broadcast %cst_25 : f32 to vector<2x8x8xf32>
    %89 = arith.mulf %87, %88 : vector<2x8x8xf32>
    %90 = arith.addf %89, %2 : vector<2x8x8xf32>
    %cst_26 = arith.constant dense<0xFF800000> : vector<2x8xf32>
    %91 = vector.multi_reduction <maximumf>, %90, %cst_26 [2] : vector<2x8x8xf32> to vector<2x8xf32>
    %92 = vector.shape_cast %91 : vector<2x8xf32> to vector<2x8x1xf32>
    %93 = vector.broadcast %92 : vector<2x8x1xf32> to vector<2x8x8xf32>
    %94 = arith.subf %90, %93 : vector<2x8x8xf32>
    %95 = math.exp %94 : vector<2x8x8xf32>
    %cst_27 = arith.constant dense<0.000000e+00> : vector<2x8xf32>
    %96 = vector.multi_reduction <add>, %95, %cst_27 [2] : vector<2x8x8xf32> to vector<2x8xf32>
    %97 = vector.shape_cast %96 : vector<2x8xf32> to vector<2x8x1xf32>
    %98 = tpu.reciprocal %97 : vector<2x8x1xf32> -> vector<2x8x1xf32>
    %99 = vector.broadcast %98 : vector<2x8x1xf32> to vector<2x8x8xf32>
    %100 = arith.mulf %95, %99 : vector<2x8x8xf32>
    "tpu.trace_start"() <{level = 10 : i32, message = "bqk,bkd->bqd"}> : () -> ()
    %cst_28 = arith.constant dense<0.000000e+00> : vector<2x8x8xf32>
    %101 = tpu.matmul %100, %86, %cst_28 {dimension_numbers = #tpu.dot_dimension_numbers<[2], [1], [1], [2], [0, 0, 0, 1, 1, 2], [0], [0]>} : vector<2x8x8xf32>, vector<2x8x8xf32>, vector<2x8x8xf32> -> vector<2x8x8xf32>
    "tpu.trace_stop"() : () -> ()
    %102 = vector.extract_strided_slice %38 {offsets = [0, 24], sizes = [16, 8], strides = [1, 1]} : vector<16x96xf32> to vector<16x8xf32>
    %103 = vector.shape_cast %102 : vector<16x8xf32> to vector<2x8x8xf32>
    %104 = vector.extract_strided_slice %38 {offsets = [0, 56], sizes = [16, 8], strides = [1, 1]} : vector<16x96xf32> to vector<16x8xf32>
    %105 = vector.shape_cast %104 : vector<16x8xf32> to vector<2x8x8xf32>
    %106 = vector.extract_strided_slice %38 {offsets = [0, 88], sizes = [16, 8], strides = [1, 1]} : vector<16x96xf32> to vector<16x8xf32>
    %107 = vector.shape_cast %106 : vector<16x8xf32> to vector<2x8x8xf32>
    "tpu.trace_start"() <{level = 10 : i32, message = "bqd,bkd->bqk"}> : () -> ()
    %cst_29 = arith.constant dense<0.000000e+00> : vector<2x8x8xf32>
    %108 = tpu.matmul %103, %105, %cst_29 {dimension_numbers = #tpu.dot_dimension_numbers<[2], [2], [1], [1], [0, 0, 0, 1, 1, 1], [0], [0]>} : vector<2x8x8xf32>, vector<2x8x8xf32>, vector<2x8x8xf32> -> vector<2x8x8xf32>
    "tpu.trace_stop"() : () -> ()
    %cst_30 = arith.constant 0.353553385 : f32
    %109 = vector.broadcast %cst_30 : f32 to vector<2x8x8xf32>
    %110 = arith.mulf %108, %109 : vector<2x8x8xf32>
    %111 = arith.addf %110, %2 : vector<2x8x8xf32>
    %cst_31 = arith.constant dense<0xFF800000> : vector<2x8xf32>
    %112 = vector.multi_reduction <maximumf>, %111, %cst_31 [2] : vector<2x8x8xf32> to vector<2x8xf32>
    %113 = vector.shape_cast %112 : vector<2x8xf32> to vector<2x8x1xf32>
    %114 = vector.broadcast %113 : vector<2x8x1xf32> to vector<2x8x8xf32>
    %115 = arith.subf %111, %114 : vector<2x8x8xf32>
    %116 = math.exp %115 : vector<2x8x8xf32>
    %cst_32 = arith.constant dense<0.000000e+00> : vector<2x8xf32>
    %117 = vector.multi_reduction <add>, %116, %cst_32 [2] : vector<2x8x8xf32> to vector<2x8xf32>
    %118 = vector.shape_cast %117 : vector<2x8xf32> to vector<2x8x1xf32>
    %119 = tpu.reciprocal %118 : vector<2x8x1xf32> -> vector<2x8x1xf32>
    %120 = vector.broadcast %119 : vector<2x8x1xf32> to vector<2x8x8xf32>
    %121 = arith.mulf %116, %120 : vector<2x8x8xf32>
    "tpu.trace_start"() <{level = 10 : i32, message = "bqk,bkd->bqd"}> : () -> ()
    %cst_33 = arith.constant dense<0.000000e+00> : vector<2x8x8xf32>
    %122 = tpu.matmul %121, %107, %cst_33 {dimension_numbers = #tpu.dot_dimension_numbers<[2], [1], [1], [2], [0, 0, 0, 1, 1, 2], [0], [0]>} : vector<2x8x8xf32>, vector<2x8x8xf32>, vector<2x8x8xf32> -> vector<2x8x8xf32>
    "tpu.trace_stop"() : () -> ()
    %123 = tpu.concatenate %59, %80, %101, %122 in 2 : vector<2x8x8xf32>, vector<2x8x8xf32>, vector<2x8x8xf32>, vector<2x8x8xf32> -> vector<2x8x32xf32>
    %124 = vector.shape_cast %123 : vector<2x8x32xf32> to vector<16x32xf32>
    %c0_34 = arith.constant 0 : index
    %c0_35 = arith.constant 0 : index
    %125 = vector.load %arg4[%c0_34, %c0_35] : memref<32x32xf32, #tpu.memory_space<vmem>>, vector<32x32xf32>
    %cst_36 = arith.constant dense<0.000000e+00> : vector<16x32xf32>
    %126 = tpu.matmul %124, %125, %cst_36 {dimension_numbers = #tpu.dot_dimension_numbers<[1], [0], [0], [1], [0, 0, 1, 1], [], []>} : vector<16x32xf32>, vector<32x32xf32>, vector<16x32xf32> -> vector<16x32xf32>
    %127 = vector.broadcast %5 : vector<1x32xf32> to vector<16x32xf32>
    %128 = arith.addf %126, %127 : vector<16x32xf32>
    %129 = arith.addf %1, %128 : vector<16x32xf32>
    %cst_37 = arith.constant dense<0.000000e+00> : vector<16xf32>
    %130 = vector.multi_reduction <add>, %129, %cst_37 [1] : vector<16x32xf32> to vector<16xf32>
    %131 = vector.shape_cast %130 : vector<16xf32> to vector<16x1xf32>
    %cst_38 = arith.constant 3.200000e+01 : f32
    %132 = vector.broadcast %cst_38 : f32 to vector<16x1xf32>
    %133 = arith.divf %131, %132 : vector<16x1xf32>
    %134 = vector.broadcast %133 : vector<16x1xf32> to vector<16x32xf32>
    %135 = arith.subf %129, %134 : vector<16x32xf32>
    %136 = arith.mulf %135, %135 : vector<16x32xf32>
    %cst_39 = arith.constant dense<0.000000e+00> : vector<16xf32>
    %137 = vector.multi_reduction <add>, %136, %cst_39 [1] : vector<16x32xf32> to vector<16xf32>
    %138 = vector.shape_cast %137 : vector<16xf32> to vector<16x1xf32>
    %cst_40 = arith.constant 0.0322580636 : f32
    %139 = vector.broadcast %cst_40 : f32 to vector<16x1xf32>
    %140 = arith.mulf %138, %139 : vector<16x1xf32>
    %141 = math.sqrt %140 : vector<16x1xf32>
    %cst_41 = arith.constant 9.99999997E-7 : f32
    %142 = vector.broadcast %cst_41 : f32 to vector<16x1xf32>
    %143 = arith.addf %141, %142 : vector<16x1xf32>
    %144 = tpu.reciprocal %143 : vector<16x1xf32> -> vector<16x1xf32>
    %145 = vector.broadcast %133 : vector<16x1xf32> to vector<16x32xf32>
    %146 = arith.subf %129, %145 : vector<16x32xf32>
    %147 = vector.broadcast %10 : vector<1x32xf32> to vector<16x32xf32>
    %148 = arith.mulf %147, %146 : vector<16x32xf32>
    %149 = vector.broadcast %144 : vector<16x1xf32> to vector<16x32xf32>
    %150 = arith.mulf %148, %149 : vector<16x32xf32>
    %151 = vector.broadcast %11 : vector<1x32xf32> to vector<16x32xf32>
    %152 = arith.addf %150, %151 : vector<16x32xf32>
    %c0_42 = arith.constant 0 : index
    %c0_43 = arith.constant 0 : index
    %153 = vector.load %arg5[%c0_42, %c0_43] : memref<32x128xf32, #tpu.memory_space<vmem>>, vector<32x128xf32>
    %cst_44 = arith.constant dense<0.000000e+00> : vector<16x128xf32>
    %154 = tpu.matmul %152, %153, %cst_44 {dimension_numbers = #tpu.dot_dimension_numbers<[1], [0], [0], [1], [0, 0, 1, 1], [], []>} : vector<16x32xf32>, vector<32x128xf32>, vector<16x128xf32> -> vector<16x128xf32>
    %155 = vector.broadcast %6 : vector<1x128xf32> to vector<16x128xf32>
    %156 = arith.addf %154, %155 : vector<16x128xf32>
    %cst_45 = arith.constant 5.000000e-01 : f32
    %157 = vector.broadcast %cst_45 : f32 to vector<16x128xf32>
    %158 = arith.mulf %157, %156 : vector<16x128xf32>
    %cst_46 = arith.constant 4.471500e-02 : f32
    %159 = vector.broadcast %cst_46 : f32 to vector<16x128xf32>
    %160 = arith.mulf %159, %156 : vector<16x128xf32>
    %161 = arith.mulf %160, %156 : vector<16x128xf32>
    %162 = arith.mulf %161, %156 : vector<16x128xf32>
    %163 = arith.addf %156, %162 : vector<16x128xf32>
    %cst_47 = arith.constant 0.797884583 : f32
    %164 = vector.broadcast %cst_47 : f32 to vector<16x128xf32>
    %165 = arith.mulf %164, %163 : vector<16x128xf32>
    %166 = math.tanh %165 : vector<16x128xf32>
    %cst_48 = arith.constant 1.000000e+00 : f32
    %167 = vector.broadcast %cst_48 : f32 to vector<16x128xf32>
    %168 = arith.addf %167, %166 : vector<16x128xf32>
    %169 = arith.mulf %158, %168 : vector<16x128xf32>
    %c0_49 = arith.constant 0 : index
    %c0_50 = arith.constant 0 : index
    %170 = vector.load %arg6[%c0_49, %c0_50] : memref<128x32xf32, #tpu.memory_space<vmem>>, vector<128x32xf32>
    %cst_51 = arith.constant dense<0.000000e+00> : vector<16x32xf32>
    %171 = tpu.matmul %169, %170, %cst_51 {dimension_numbers = #tpu.dot_dimension_numbers<[1], [0], [0], [1], [0, 0, 1, 1], [], []>} : vector<16x128xf32>, vector<128x32xf32>, vector<16x32xf32> -> vector<16x32xf32>
    %172 = vector.broadcast %7 : vector<1x32xf32> to vector<16x32xf32>
    %173 = arith.addf %171, %172 : vector<16x32xf32>
    %174 = arith.addf %129, %173 : vector<16x32xf32>
    %175 = vector.shape_cast %174 : vector<16x32xf32> to vector<2x8x32xf32>
    %c0_52 = arith.constant 0 : index
    %c0_53 = arith.constant 0 : index
    %c0_54 = arith.constant 0 : index
    %176 = vector.load %arg8[%c0_52, %c0_53, %c0_54] : memref<2x8x32xf32, #tpu.memory_space<vmem>>, vector<2x8x32xf32>
    tpu.vector_store %arg8[%c0_52, %c0_53, %c0_54], %175 {strides = array<i32>} : memref<2x8x32xf32, #tpu.memory_space<vmem>>, vector<2x8x32xf32>,
    return
  }
  func.func @transform_0(%arg0: i32) -> (i32, i32, i32) {
    %c0_i32 = arith.constant 0 : i32
    %c0_i32_0 = arith.constant 0 : i32
    %c0_i32_1 = arith.constant 0 : i32
    return %arg0, %c0_i32, %c0_i32_0 : i32, i32, i32
  }
  func.func @transform_1(%arg0: i32) -> (i32, i32, i32) {
    %c0_i32 = arith.constant 0 : i32
    %c0_i32_0 = arith.constant 0 : i32
    %c0_i32_1 = arith.constant 0 : i32
    return %arg0, %c0_i32, %c0_i32_0 : i32, i32, i32
  }
  func.func @transform_2(%arg0: i32) -> (i32, i32) {
    %c0_i32 = arith.constant 0 : i32
    %c0_i32_0 = arith.constant 0 : i32
    %c0_i32_1 = arith.constant 0 : i32
    return %c0_i32, %c0_i32_0 : i32, i32
  }
  func.func @transform_3(%arg0: i32) -> (i32, i32) {
    %c0_i32 = arith.constant 0 : i32
    %c0_i32_0 = arith.constant 0 : i32
    %c0_i32_1 = arith.constant 0 : i32
    return %c0_i32, %c0_i32_0 : i32, i32
  }
  func.func @transform_4(%arg0: i32) -> (i32, i32) {
    %c0_i32 = arith.constant 0 : i32
    %c0_i32_0 = arith.constant 0 : i32
    %c0_i32_1 = arith.constant 0 : i32
    return %c0_i32, %c0_i32_0 : i32, i32
  }
  func.func @transform_5(%arg0: i32) -> (i32, i32) {
    %c0_i32 = arith.constant 0 : i32
    %c0_i32_0 = arith.constant 0 : i32
    %c0_i32_1 = arith.constant 0 : i32
    return %c0_i32, %c0_i32_0 : i32, i32
  }
  func.func @transform_6(%arg0: i32) -> (i32, i32) {
    %c0_i32 = arith.constant 0 : i32
    %c0_i32_0 = arith.constant 0 : i32
    %c0_i32_1 = arith.constant 0 : i32
    return %c0_i32, %c0_i32_0 : i32, i32
  }
  func.func @transform_7(%arg0: i32) -> (i32, i32, i32) {
    %c0_i32 = arith.constant 0 : i32
    %c0_i32_0 = arith.constant 0 : i32
    %c0_i32_1 = arith.constant 0 : i32
    return %arg0, %c0_i32, %c0_i32_0 : i32, i32, i32
  }
}

</mosaic_0001>

<bundles_post_ra>
// kernel: tpu_custom_call.1
= control target key start
LH: loop header
LB: loop body
LE: loop exit
PB: predicated region body
PF: predicated region fallthrough
CT: control target
= control target key end

     0   :  { %vm32_vm0 = vcmask 261120   ;;  %s2606_s0 = inlined_call_operand.vmem [shape: f32[2,8,32], index: 0, kind: input, shape index: {}]   ;;  %s2607_s1 = inlined_call_operand.vmem [shape: f32[2,8,8], index: 1, kind: input, shape index: {}]   ;;  %s2608_s2 = inlined_call_operand.vmem [shape: f32[32,96], index: 2, kind: input, shape index: {}]   ;;  %s2609_s3 = inlined_call_operand.vmem [shape: f32[32,32], index: 3, kind: input, shape index: {}]   ;;  %s2610_s4 = inlined_call_operand.vmem [shape: f32[32,128], index: 4, kind: input, shape index: {}]   ;;  %s2611_s5 = inlined_call_operand.vmem [shape: f32[128,32], index: 5, kind: input, shape index: {}]   ;;  %s2612_s6 = inlined_call_operand.vmem [shape: f32[8,128], index: 6, kind: input, shape index: {}]   ;;  %s2613_s7 = inlined_call_operand.hbm [shape: f32[2,8,32], index: 7, kind: output, shape index: {}]  }
   0x1   :  { %v2306_v0 = vld [vmem:[%s2606_s0] sm:$0xff]  ;;  %v2311_v1 = vld [vmem:[%s2606_s0 + $0x8] sm:$0xff] }
   0x2   :  { %v33_v2 = vsel %vm32_vm0, %v2306_v0, 0.0 }
   0x3   :  { %12 = vsyncpa [#allocation3], 0  ;;  %34 = vadd.xlane.f32.xlu0 %v33_v2  ;;  %v36_v3 = vsel %vm32_vm0, %v2311_v1, 0.0  ;;  %v89_v14 = vld [vmem:[%s2608_s2 + $0x18] sm:$0xff]  ;;  %v88_v15 = vld [vmem:[%s2608_s2 + $0x10] sm:$0xff]  ;;  %v72_v25 = vlaneseq  ;;  %v2245_v49 = vmov 0.0  }
   0x4   :  { %2005 = vmatprep.subr.mxu1 %v89_v14  ;;  %v87_v16 = vld [vmem:[%s2608_s2 + $0x8] sm:$0xff]  ;;  %v86_v17 = vld [vmem:[%s2608_s2] sm:$0xff]  ;;  %2026 = vmatprep.subr.mxu0 %v2245_v49  ;;  %vm2246_vm5 = vmmov 0   ;;  %vm178_vm6 = vcmask 64512   ;;  %s2248_s17 = smov 64   ;;  %s2249_s18 = smov 88  }
   0x5   :  { %2006 = vmatpush3.msra.mxu1 %v89_v14  ;;  %v2333_v32 = vshrl.u32 %v72_v25, 7  ;;  %v2339_v37 = vld [vmem:[%s2612_s6] sm:$0xff]  ;;  %2028 = vmatprep.mubr.msk.f32.mxu0 %vm2246_vm5, %v2245_v49  ;;  %s2247_s6 = smov 96   ;;  %v2381_v2 = vld [vmem:[%s2607_s1 + $0x8] sm:$0xff]  ;;  %s2251_s19 = smov 56   ;;  %vm1539_vm7 = vcmask 195584  }
   0x6   :  { %2007 = vmatprep.subr.mxu1 %v88_v15  ;;  %v2375_v59 = vld [vmem:[%s2607_s1] sm:$0xff]  ;;  %s2250_s1 = smov 120   ;;  %s2252_s20 = smov 80   ;;  %vm1536_vm8 = vcmask 130048  }
   0x7   :  { %37 = vadd.xlane.f32.xlu0 %v36_v3  ;;  %2008 = vmatpush3.msra.mxu1 %v88_v15  ;;  %v74_v36 = vsub.s32 4, %v2333_v32  ;;  %v82_v39 = vsub.s32 5, %v2333_v32  ;;  %v92_v50 = vsub.s32 0, %v2333_v32  ;;  %s2253_s21 = smov 112   ;;  %s2254_s22 = smov 48  }
   0x8   :  { %2009 = vmatprep.subr.mxu1 %v87_v16  ;;  %s2255_s23 = smov 72   ;;  %s2256_s24 = smov 104  }
   0x9   :  { %2010 = vmatpush3.msra.mxu1 %v87_v16  ;;  %v75_v38 = vrot.slane %v2339_v37, %v74_v36  ;;  %v83_v41 = vrot.slane %v2339_v37, %v82_v39  ;;  %v93_v51 = vrot.slane %v2339_v37, %v92_v50  ;;  %s2257_s25 = smov 40   ;;  %s2258_s26 = smov 8  }
   0xa   :  { %2011 = vmatprep.subr.mxu1 %v86_v17  ;;  %s2259_s27 = smov 16   ;;  %s2260_s2 = smov 24  }
   0xb   :  { %2012 = vmatpush3.msra.mxu1 %v86_v17 }
   0xc   :  { %2016 = vmatprep.subr.mxu1 %v2245_v49 }
  0x8c   :  { %v35_v4 = vpop.xlane.xlu0 %34 }
  0x8d   :  { %v40_v5 = vmul.f32 0.03125, %v35_v4 }
  0x8f   :  { %v42_v6 = vsub.f32 %v2306_v0, %v40_v5 }
  0x90   :  { %v38_v7 = vpop.xlane.xlu0 %37 }
  0x91   :  { %v41_v8 = vmul.f32 0.03125, %v38_v7  ;;  %v44_v9 = vmul.f32 %v42_v6, %v42_v6  ;;  %v76_v40 = vmul.f32 %v75_v38, %v42_v6 }
  0x93   :  { %v43_v10 = vsub.f32 %v2311_v1, %v41_v8  ;;  %v46_v11 = vsel %vm32_vm0, %v44_v9, 0.0 }
  0x94   :  { %47 = vadd.xlane.f32.xlu1 %v46_v11 }
  0x95   :  { %v45_v12 = vmul.f32 %v43_v10, %v43_v10  ;;  %v77_v44 = vmul.f32 %v75_v38, %v43_v10 }
  0x97   :  { %v49_v13 = vsel %vm32_vm0, %v45_v12, 0.0 }
  0x98   :  { %50 = vadd.xlane.f32.xlu1 %v49_v13 }
 0x11d   :  { %v48_v18 = vpop.xlane.xlu1 %47 }
 0x11e   :  { %v52_v19 = vmul.f32 0.032258064, %v48_v18 }
 0x120   :  { %2171 = vrsqrt.f32 %v52_v19  ;;  %vm56_vm1 = vcmp.eq.f32.partialorder %v52_v19, inf  ;;  %v59_v24 = vand.u32 2147483648, %v52_v19  ;;  %vm58_vm2 = vcmp.eq.f32.partialorder %v52_v19, 0.0 }
 0x121   :  { %v51_v20 = vpop.xlane.xlu1 %50 }
 0x122   :  { %v53_v21 = vmul.f32 0.032258064, %v51_v20 }
 0x124   :  { %2173 = vrsqrt.f32 %v53_v21  ;;  %vm63_vm3 = vcmp.eq.f32.partialorder %v53_v21, inf  ;;  %v66_v31 = vand.u32 2147483648, %v53_v21  ;;  %vm65_vm4 = vcmp.eq.f32.partialorder %v53_v21, 0.0 }
 0x12d   :  { %v2172_v22 = vpop.eup %2171 }
 0x12e   :  { %v55_v23 = vmul.f32 %v2172_v22, %v52_v19 }
 0x130   :  { %v57_v26 = vsel %vm56_vm1, %v52_v19, %v55_v23 }
 0x131   :  { %v2174_v27 = vpop.eup %2173  ;;  %v60_v28 = vsel %vm58_vm2, %v59_v24, %v57_v26 }
 0x132   :  { %v62_v29 = vmul.f32 %v2174_v27, %v53_v21  ;;  %v68_v30 = vadd.f32 1e-06, %v60_v28 }
 0x134   :  { %v64_v33 = vsel %vm63_vm3, %v53_v21, %v62_v29  ;;  %2175 = vrcp.f32 %v68_v30 }
 0x135   :  { %v67_v34 = vsel %vm65_vm4, %v66_v31, %v64_v33 }
 0x136   :  { %v69_v35 = vadd.f32 1e-06, %v67_v34 }
 0x138   :  { %2177 = vrcp.f32 %v69_v35 }
 0x141   :  { %v2176_v42 = vpop.eup %2175 }
 0x142   :  { %v78_v43 = vmul.f32 %v2176_v42, %v76_v40 }
 0x144   :  { %v84_v45 = vadd.f32 %v83_v41, %v78_v43 }
 0x145   :  { %v2178_v46 = vpop.eup %2177 }
 0x146   :  { %v79_v47 = vmul.f32 %v2178_v46, %v77_v44  ;;  %2013 = vmatprep.mubr.msk.f32.mxu1 %vm32_vm0, %v84_v45 }
 0x148   :  { %v85_v48 = vadd.f32 %v83_v41, %v79_v47 }
 0x14a   :  { %2014 = vmatmul.mubr.msk.f32.vlgmr.msra.gmra.mxu1 %vm32_vm0, %v85_v48 }
 0x14b   :  { %2018 = vmatprep.mubr.msk.f32.mxu1 %vm2246_vm5, %v2245_v49 }
 0x20a   :  { %v2015_v52 = vpop.f32.mrf.mxu1 }
 0x20b   :  { %v2354_v53 = vadd.f32 %v2015_v52, %v93_v51 }
 0x20c   :  { %v166_v54 = vpop.f32.mrf.mxu1 }
 0x20d   :  { %v2356_v55 = vadd.f32 %v166_v54, %v93_v51  ;;  %254 = vrot.lane.b32.xlu1 %v2354_v53, %s2247_s6 }
 0x20f   :  { %176 = vrot.lane.b32.xlu0 %v2356_v55, %s2247_s6 }
 0x27f   :  { %v255_v57 = vpop.permute.xlu1 %254 }
 0x281   :  { %v177_v56 = vpop.permute.xlu0 %176 }
 0x282   :  { %2017 = vmatpush3.xpose.msk.msra.mxu1 %vm178_vm6, %v177_v56 }
 0x283   :  { %2021 = vmatprep.subr.mxu1 %v2245_v49 }
 0x285   :  { %2019 = vmatmul.mubr.msk.f32.vlgmr.msra.gmra.mxu1 %vm178_vm6, %v2356_v55 }
 0x286   :  { %2022 = vmatpush3.xpose.msk.msra.mxu1 %vm178_vm6, %v255_v57  ;;  %2023 = vmatprep.mubr.msk.f32.mxu1 %vm2246_vm5, %v2245_v49 }
 0x287   :  { %2031 = vmatprep.subr.mxu1 %v2245_v49 }
 0x289   :  { %2024 = vmatmul.mubr.msk.f32.vlgmr.msra.gmra.mxu1 %vm178_vm6, %v2354_v53 }
 0x28a   :  { %2033 = vmatprep.mubr.msk.f32.mxu1 %vm2246_vm5, %v2245_v49 }
 0x345   :  { %v249_v58 = vpop.f32.mrf.mxu1 }
 0x346   :  { %v330_v60 = vmul.f32 0.35355338, %v249_v58 }
 0x347   :  { %v2020_v61 = vpop.f32.mrf.mxu1 }
 0x348   :  { %v332_v62 = vadd.f32 %v330_v60, %v2375_v59 }
 0x349   :  { %v326_v63 = vpop.f32.mrf.mxu1 }
 0x34a   :  { %v331_v3 = vmul.f32 0.35355338, %v326_v63  ;;  %v334_v4 = vsel %vm178_vm6, %v332_v62, -inf }
 0x34b   :  { %335 = vmax.xlane.f32.xlu1 %v334_v4  ;;  %v2025_v5 = vpop.f32.mrf.mxu1 }
 0x34c   :  { %v333_v6 = vadd.f32 %v331_v3, %v2381_v2 }
 0x34e   :  { %v337_v7 = vsel %vm178_vm6, %v333_v6, -inf }
 0x34f   :  { %338 = vmax.xlane.f32.xlu0 %v337_v7 }
 0x35c   :  { %432 = vrot.lane.b32.xlu1 %v2354_v53, %s2248_s17 }
 0x360   :  { %510 = vrot.lane.b32.xlu1 %v2356_v55, %s2249_s18 }
 0x364   :  { %588 = vrot.lane.b32.xlu1 %v2354_v53, %s2249_s18 }
 0x3d4   :  { %v336_v8 = vpop.xlane.xlu1 %335 }
 0x3d5   :  { %v340_v9 = vsub.f32 %v332_v62, %v336_v8 }
 0x3d7   :  { %v342_v10 = vmul.f32 1.442695, %v340_v9 }
 0x3d8   :  { %v433_v11 = vpop.permute.xlu1 %432  ;;  %v339_v12 = vpop.xlane.xlu0 %338 }
 0x3d9   :  { %2179 = vpow2.f32 %v342_v10  ;;  %v341_v13 = vsub.f32 %v333_v6, %v339_v12  ;;  %2032 = vmatpush3.msra.mxu1 %v433_v11 }
 0x3da   :  { %2041 = vmatprep.subr.mxu1 %v2245_v49 }
 0x3db   :  { %v344_v14 = vmul.f32 1.442695, %v341_v13 }
 0x3dc   :  { %v511_v19 = vpop.permute.xlu1 %510 }
 0x3dd   :  { %2181 = vpow2.f32 %v344_v14 }
 0x3e0   :  { %v589_v20 = vpop.permute.xlu1 %588 }
 0x3e6   :  { %v2180_v15 = vpop.eup %2179 }
 0x3e7   :  { %v346_v16 = vsel %vm178_vm6, %v2180_v15, 0.0 }
 0x3e8   :  { %347 = vadd.xlane.f32.xlu0 %v346_v16 }
 0x3ea   :  { %v2182_v17 = vpop.eup %2181 }
 0x3eb   :  { %v349_v18 = vsel %vm178_vm6, %v2182_v17, 0.0 }
 0x3ec   :  { %350 = vadd.xlane.f32.xlu1 %v349_v18 }
 0x3fd   :  { %586 = vrot.lane.b32.xlu1 %v2354_v53, %s2250_s1 }
 0x3fe   :  { %356 = vrot.lane.b32.xlu0 %v2356_v55, %s2248_s17 }
 0x402   :  { %508 = vrot.lane.b32.xlu0 %v2356_v55, %s2250_s1 }
 0x471   :  { %v348_v21 = vpop.xlane.xlu0 %347 }
 0x472   :  { %2183 = vrcp.f32 %v348_v21 }
 0x475   :  { %v351_v22 = vpop.xlane.xlu1 %350  ;;  %v357_v23 = vpop.permute.xlu0 %356 }
 0x476   :  { %2185 = vrcp.f32 %v351_v22  ;;  %2027 = vmatpush3.msra.mxu0 %v357_v23 }
 0x477   :  { %2036 = vmatprep.subr.mxu0 %v2245_v49 }
 0x479   :  { %v509_v28 = vpop.permute.xlu0 %508  ;;  %v587_v29 = vpop.permute.xlu1 %586 }
 0x47f   :  { %v2184_v24 = vpop.eup %2183 }
 0x480   :  { %v354_v25 = vmul.f32 %v2184_v24, %v2180_v15 }
 0x482   :  { %2029 = vmatmul.mubr.msk.f32.vlgmr.msra.gmra.mxu0 %vm178_vm6, %v354_v25 }
 0x483   :  { %v2186_v26 = vpop.eup %2185  ;;  %2037 = vmatpush3.xpose.msk.msra.mxu0 %vm178_vm6, %v511_v19  ;;  %2038 = vmatprep.mubr.msk.f32.mxu0 %vm2246_vm5, %v2245_v49 }
 0x484   :  { %v355_v27 = vmul.f32 %v2186_v26, %v2182_v17  ;;  %2046 = vmatprep.subr.mxu0 %v2245_v49 }
 0x486   :  { %2034 = vmatmul.mubr.msk.f32.vlgmr.msra.gmra.mxu1 %vm178_vm6, %v355_v27  ;;  %2039 = vmatmul.mubr.msk.f32.vlgmr.msra.gmra.mxu0 %vm178_vm6, %v509_v28 }
 0x487   :  { %2042 = vmatpush3.xpose.msk.msra.mxu1 %vm178_vm6, %v589_v20  ;;  %2043 = vmatprep.mubr.msk.f32.mxu1 %vm2246_vm5, %v2245_v49 }
 0x488   :  { %2051 = vmatprep.subr.mxu1 %v2245_v49  ;;  %2048 = vmatprep.mubr.msk.f32.mxu0 %vm2246_vm5, %v2245_v49 }
 0x48a   :  { %2044 = vmatmul.mubr.msk.f32.vlgmr.msra.gmra.mxu1 %vm178_vm6, %v587_v29 }
 0x48b   :  { %2053 = vmatprep.mubr.msk.f32.mxu1 %vm2246_vm5, %v2245_v49 }
 0x542   :  { %v2412_v30 = vpop.f32.mrf.mxu0 }
 0x544   :  { %v2030_v31 = vpop.f32.mrf.mxu0 }
 0x546   :  { %v2414_v33 = vpop.f32.mrf.mxu1  ;;  %v582_v34 = vpop.f32.mrf.mxu0 }
 0x547   :  { %v664_v35 = vmul.f32 0.35355338, %v582_v34 }
 0x548   :  { %v2035_v36 = vpop.f32.mrf.mxu1  ;;  %v2040_v38 = vpop.f32.mrf.mxu0 }
 0x549   :  { %v666_v39 = vadd.f32 %v664_v35, %v2375_v59 }
 0x54a   :  { %v660_v40 = vpop.f32.mrf.mxu1 }
 0x54b   :  { %v665_v41 = vmul.f32 0.35355338, %v660_v40  ;;  %v668_v42 = vsel %vm178_vm6, %v666_v39, -inf }
 0x54c   :  { %669 = vmax.xlane.f32.xlu0 %v668_v42  ;;  %v2045_v43 = vpop.f32.mrf.mxu1 }
 0x54d   :  { %v667_v44 = vadd.f32 %v665_v41, %v2381_v2 }
 0x54f   :  { %v671_v45 = vsel %vm178_vm6, %v667_v44, -inf }
 0x550   :  { %672 = vmax.xlane.f32.xlu1 %v671_v45 }
 0x561   :  { %766 = vrot.lane.b32.xlu1 %v2354_v53, %s2251_s19 }
 0x562   :  { %690 = vrot.lane.b32.xlu0 %v2356_v55, %s2251_s19 }
 0x565   :  { %844 = vrot.lane.b32.xlu1 %v2356_v55, %s2252_s20 }
 0x569   :  { %922 = vrot.lane.b32.xlu1 %v2354_v53, %s2252_s20 }
 0x56d   :  { %920 = vrot.lane.b32.xlu1 %v2354_v53, %s2253_s21 }
 0x5d5   :  { %v670_v46 = vpop.xlane.xlu0 %669 }
 0x5d6   :  { %v674_v47 = vsub.f32 %v666_v39, %v670_v46 }
 0x5d8   :  { %v676_v48 = vmul.f32 1.442695, %v674_v47 }
 0x5d9   :  { %v691_v50 = vpop.permute.xlu0 %690  ;;  %v673_v51 = vpop.xlane.xlu1 %672 }
 0x5da   :  { %2187 = vpow2.f32 %v676_v48  ;;  %v675_v52 = vsub.f32 %v667_v44, %v673_v51  ;;  %2047 = vmatpush3.msra.mxu0 %v691_v50 }
 0x5db   :  { %2056 = vmatprep.subr.mxu0 %v2245_v49 }
 0x5dc   :  { %v678_v54 = vmul.f32 1.442695, %v675_v52 }
 0x5dd   :  { %v767_v56 = vpop.permute.xlu1 %766 }
 0x5de   :  { %2189 = vpow2.f32 %v678_v54  ;;  %2052 = vmatpush3.msra.mxu1 %v767_v56 }
 0x5df   :  { %2061 = vmatprep.subr.mxu1 %v2245_v49 }
 0x5e1   :  { %v845_v3 = vpop.permute.xlu1 %844 }
 0x5e5   :  { %v923_v7 = vpop.permute.xlu1 %922 }
 0x5e7   :  { %v2188_v57 = vpop.eup %2187 }
 0x5e8   :  { %v680_v58 = vsel %vm178_vm6, %v2188_v57, 0.0 }
 0x5e9   :  { %681 = vadd.xlane.f32.xlu0 %v680_v58  ;;  %v921_v10 = vpop.permute.xlu1 %920 }
 0x5eb   :  { %v2190_v60 = vpop.eup %2189 }
 0x5ec   :  { %v683_v61 = vsel %vm178_vm6, %v2190_v60, 0.0 }
 0x5ed   :  { %684 = vadd.xlane.f32.xlu0 %v683_v61 }
 0x603   :  { %842 = vrot.lane.b32.xlu0 %v2356_v55, %s2253_s21 }
 0x672   :  { %v682_v62 = vpop.xlane.xlu0 %681 }
 0x673   :  { %2191 = vrcp.f32 %v682_v62 }
 0x676   :  { %v685_v63 = vpop.xlane.xlu0 %684 }
 0x677   :  { %2193 = vrcp.f32 %v685_v63 }
 0x67a   :  { %v843_v9 = vpop.permute.xlu0 %842 }
 0x680   :  { %v2192_v4 = vpop.eup %2191 }
 0x681   :  { %v688_v5 = vmul.f32 %v2192_v4, %v2188_v57 }
 0x683   :  { %2049 = vmatmul.mubr.msk.f32.vlgmr.msra.gmra.mxu0 %vm178_vm6, %v688_v5 }
 0x684   :  { %v2194_v6 = vpop.eup %2193  ;;  %2057 = vmatpush3.xpose.msk.msra.mxu0 %vm178_vm6, %v845_v3  ;;  %2058 = vmatprep.mubr.msk.f32.mxu0 %vm2246_vm5, %v2245_v49 }
 0x685   :  { %v689_v8 = vmul.f32 %v2194_v6, %v2190_v60  ;;  %2066 = vmatprep.subr.mxu0 %v2245_v49 }
 0x687   :  { %2054 = vmatmul.mubr.msk.f32.vlgmr.msra.gmra.mxu1 %vm178_vm6, %v689_v8  ;;  %2059 = vmatmul.mubr.msk.f32.vlgmr.msra.gmra.mxu0 %vm178_vm6, %v843_v9 }
 0x688   :  { %2062 = vmatpush3.xpose.msk.msra.mxu1 %vm178_vm6, %v923_v7  ;;  %2063 = vmatprep.mubr.msk.f32.mxu1 %vm2246_vm5, %v2245_v49 }
 0x689   :  { %2071 = vmatprep.subr.mxu1 %v2245_v49  ;;  %2068 = vmatprep.mubr.msk.f32.mxu0 %vm2246_vm5, %v2245_v49 }
 0x68b   :  { %2064 = vmatmul.mubr.msk.f32.vlgmr.msra.gmra.mxu1 %vm178_vm6, %v921_v10 }
 0x68c   :  { %2073 = vmatprep.mubr.msk.f32.mxu1 %vm2246_vm5, %v2245_v49 }
 0x743   :  { %v2446_v11 = vpop.f32.mrf.mxu0 }
 0x745   :  { %v2050_v12 = vpop.f32.mrf.mxu0 }
 0x747   :  { %v2448_v13 = vpop.f32.mrf.mxu1  ;;  %v916_v14 = vpop.f32.mrf.mxu0 }
 0x748   :  { %v998_v15 = vmul.f32 0.35355338, %v916_v14 }
 0x749   :  { %v2055_v16 = vpop.f32.mrf.mxu1  ;;  %v2060_v17 = vpop.f32.mrf.mxu0 }
 0x74a   :  { %v1000_v18 = vadd.f32 %v998_v15, %v2375_v59 }
 0x74b   :  { %v994_v19 = vpop.f32.mrf.mxu1 }
 0x74c   :  { %v999_v20 = vmul.f32 0.35355338, %v994_v19  ;;  %v1002_v21 = vsel %vm178_vm6, %v1000_v18, -inf }
 0x74d   :  { %1003 = vmax.xlane.f32.xlu0 %v1002_v21  ;;  %v2065_v22 = vpop.f32.mrf.mxu1 }
 0x74e   :  { %v1001_v23 = vadd.f32 %v999_v20, %v2381_v2  ;;  %v1545_v22 = vld [vmem:[%s2609_s3 + $0x18] sm:$0xff] }
 0x750   :  { %v1005_v24 = vsel %vm178_vm6, %v1001_v23, -inf }
 0x751   :  { %1006 = vmax.xlane.f32.xlu1 %v1005_v24  ;;  %v1542_v24 = vld [vmem:[%s2609_s3] sm:$0xff] }
 0x762   :  { %1100 = vrot.lane.b32.xlu1 %v2354_v53, %s2254_s22 }
 0x763   :  { %1024 = vrot.lane.b32.xlu0 %v2356_v55, %s2254_s22 }
 0x766   :  { %1178 = vrot.lane.b32.xlu1 %v2356_v55, %s2255_s23 }
 0x76a   :  { %1256 = vrot.lane.b32.xlu1 %v2354_v53, %s2255_s23 }
 0x76e   :  { %1254 = vrot.lane.b32.xlu1 %v2354_v53, %s2256_s24 }
 0x7d6   :  { %v1004_v25 = vpop.xlane.xlu0 %1003 }
 0x7d7   :  { %v1008_v26 = vsub.f32 %v1000_v18, %v1004_v25 }
 0x7d9   :  { %v1010_v27 = vmul.f32 1.442695, %v1008_v26 }
 0x7da   :  { %v1025_v28 = vpop.permute.xlu0 %1024  ;;  %v1007_v29 = vpop.xlane.xlu1 %1006 }
 0x7db   :  { %2195 = vpow2.f32 %v1010_v27  ;;  %v1009_v31 = vsub.f32 %v1001_v23, %v1007_v29  ;;  %2067 = vmatpush3.msra.mxu0 %v1025_v28  ;;  %v1543_v23 = vld [vmem:[%s2609_s3 + $0x8] sm:$0xff] }
 0x7dc   :  { %2076 = vmatprep.subr.mxu0 %v2245_v49 }
 0x7dd   :  { %v1012_v34 = vmul.f32 1.442695, %v1009_v31 }
 0x7de   :  { %v1101_v35 = vpop.permute.xlu1 %1100 }
 0x7df   :  { %2197 = vpow2.f32 %v1012_v34  ;;  %2072 = vmatpush3.msra.mxu1 %v1101_v35 }
 0x7e0   :  { %2081 = vmatprep.subr.mxu1 %v2245_v49 }
 0x7e2   :  { %v1179_v43 = vpop.permute.xlu1 %1178 }
 0x7e6   :  { %v1257_v47 = vpop.permute.xlu1 %1256 }
 0x7e8   :  { %v2196_v36 = vpop.eup %2195 }
 0x7e9   :  { %v1014_v38 = vsel %vm178_vm6, %v2196_v36, 0.0 }
 0x7ea   :  { %1015 = vadd.xlane.f32.xlu0 %v1014_v38  ;;  %v1255_v51 = vpop.permute.xlu1 %1254 }
 0x7ec   :  { %v2198_v39 = vpop.eup %2197 }
 0x7ed   :  { %v1017_v40 = vsel %vm178_vm6, %v2198_v39, 0.0 }
 0x7ee   :  { %1018 = vadd.xlane.f32.xlu0 %v1017_v40 }
 0x804   :  { %1176 = vrot.lane.b32.xlu0 %v2356_v55, %s2256_s24 }
 0x873   :  { %v1016_v41 = vpop.xlane.xlu0 %1015 }
 0x874   :  { %2199 = vrcp.f32 %v1016_v41 }
 0x877   :  { %v1019_v42 = vpop.xlane.xlu0 %1018 }
 0x878   :  { %2201 = vrcp.f32 %v1019_v42 }
 0x87b   :  { %v1177_v50 = vpop.permute.xlu0 %1176 }
 0x881   :  { %v2200_v44 = vpop.eup %2199 }
 0x882   :  { %v1022_v45 = vmul.f32 %v2200_v44, %v2196_v36 }
 0x884   :  { %2069 = vmatmul.mubr.msk.f32.vlgmr.msra.gmra.mxu0 %vm178_vm6, %v1022_v45  ;;  %v1548_v45 = vsub.s32 1, %v2333_v32 }
 0x885   :  { %v2202_v46 = vpop.eup %2201  ;;  %2077 = vmatpush3.xpose.msk.msra.mxu0 %vm178_vm6, %v1179_v43  ;;  %2078 = vmatprep.mubr.msk.f32.mxu0 %vm2246_vm5, %v2245_v49 }
 0x886   :  { %v1023_v48 = vmul.f32 %v2202_v46, %v2198_v39  ;;  %2086 = vmatprep.subr.mxu0 %v2245_v49  ;;  %v1549_v46 = vrot.slane %v2339_v37, %v1548_v45  ;;  %v1797_v45 = vld [vmem:[%s2611_s5 + $0x28] sm:$0xff] }
 0x888   :  { %2074 = vmatmul.mubr.msk.f32.vlgmr.msra.gmra.mxu1 %vm178_vm6, %v1023_v48  ;;  %2079 = vmatmul.mubr.msk.f32.vlgmr.msra.gmra.mxu0 %vm178_vm6, %v1177_v50 }
 0x889   :  { %2082 = vmatpush3.xpose.msk.msra.mxu1 %vm178_vm6, %v1257_v47  ;;  %2083 = vmatprep.mubr.msk.f32.mxu1 %vm2246_vm5, %v2245_v49 }
 0x88a   :  { %2091 = vmatprep.subr.mxu1 %v2245_v49  ;;  %2088 = vmatprep.mubr.msk.f32.mxu0 %vm2246_vm5, %v2245_v49 }
 0x88c   :  { %2084 = vmatmul.mubr.msk.f32.vlgmr.msra.gmra.mxu1 %vm178_vm6, %v1255_v51 }
 0x88d   :  { %2093 = vmatprep.mubr.msk.f32.mxu1 %vm2246_vm5, %v2245_v49 }
 0x944   :  { %v1096_v52 = vpop.f32.mrf.mxu0 }
 0x946   :  { %v2070_v54 = vpop.f32.mrf.mxu0 }
 0x948   :  { %v1172_v56 = vpop.f32.mrf.mxu1  ;;  %v1250_v57 = vpop.f32.mrf.mxu0 }
 0x949   :  { %v1332_v58 = vmul.f32 0.35355338, %v1250_v57 }
 0x94a   :  { %v2075_v60 = vpop.f32.mrf.mxu1  ;;  %v2080_v61 = vpop.f32.mrf.mxu0 }
 0x94b   :  { %v1334_v62 = vadd.f32 %v1332_v58, %v2375_v59 }
 0x94c   :  { %v1328_v63 = vpop.f32.mrf.mxu1 }
 0x94d   :  { %v1333_v3 = vmul.f32 0.35355338, %v1328_v63  ;;  %v1336_v4 = vsel %vm178_vm6, %v1334_v62, -inf }
 0x94e   :  { %1337 = vmax.xlane.f32.xlu0 %v1336_v4  ;;  %v2085_v5 = vpop.f32.mrf.mxu1  ;;  %v1688_v4 = vld [vmem:[%s2610_s4 + $0x18] sm:$0xff] }
 0x94f   :  { %v1335_v6 = vadd.f32 %v1333_v3, %v2381_v2  ;;  %v1687_v5 = vld [vmem:[%s2610_s4 + $0x10] sm:$0xff] }
 0x951   :  { %v1339_v7 = vsel %vm178_vm6, %v1335_v6, -inf }
 0x952   :  { %1340 = vmax.xlane.f32.xlu1 %v1339_v7  ;;  %v1685_v7 = vld [vmem:[%s2610_s4] sm:$0xff] }
 0x963   :  { %1434 = vrot.lane.b32.xlu1 %v2354_v53, %s2257_s25 }
 0x967   :  { %1512 = vrot.lane.b32.xlu1 %v2446_v11, %s2258_s26 }
 0x96b   :  { %1514 = vrot.lane.b32.xlu1 %v2448_v13, %s2258_s26 }
 0x96f   :  { %1522 = vrot.lane.b32.xlu1 %v1172_v56, %s2259_s27 }
 0x9d7   :  { %v1338_v49 = vpop.xlane.xlu0 %1337 }
 0x9d8   :  { %v1342_v59 = vsub.f32 %v1334_v62, %v1338_v49 }
 0x9da   :  { %v1344_v8 = vmul.f32 1.442695, %v1342_v59 }
 0x9db   :  { %v1341_v9 = vpop.xlane.xlu1 %1340 }
 0x9dc   :  { %2203 = vpow2.f32 %v1344_v8  ;;  %v1343_v2 = vsub.f32 %v1335_v6, %v1341_v9  ;;  %v1686_v6 = vld [vmem:[%s2610_s4 + $0x8] sm:$0xff] }
 0x9de   :  { %v1346_v10 = vmul.f32 1.442695, %v1343_v2 }
 0x9df   :  { %v1435_v12 = vpop.permute.xlu1 %1434 }
 0x9e0   :  { %2205 = vpow2.f32 %v1346_v10  ;;  %2092 = vmatpush3.msra.mxu1 %v1435_v12 }
 0x9e1   :  { %2096 = vmatprep.subr.mxu1 %v1545_v22 }
 0x9e3   :  { %v1513_v29 = vpop.permute.xlu1 %1512 }
 0x9e4   :  { %v1534_v35 = vsel %vm178_vm6, %v2412_v30, %v1513_v29 }
 0x9e7   :  { %v1515_v31 = vpop.permute.xlu1 %1514 }
 0x9e8   :  { %v1535_v41 = vsel %vm178_vm6, %v2414_v33, %v1515_v31 }
 0x9e9   :  { %v2204_v53 = vpop.eup %2203 }
 0x9ea   :  { %v1348_v14 = vsel %vm178_vm6, %v2204_v53, 0.0 }
 0x9eb   :  { %1349 = vadd.xlane.f32.xlu0 %v1348_v14  ;;  %v1523_v36 = vpop.permute.xlu1 %1522 }
 0x9ec   :  { %v1538_v42 = vsel %vm1536_vm8, %v1535_v41, %v1523_v36  ;;  %v1805_v36 = vld [vmem:[%s2611_s5 + $0x68] sm:$0xff] }
 0x9ed   :  { %v2206_v11 = vpop.eup %2205  ;;  %v1801_v41 = vld [vmem:[%s2611_s5 + $0x48] sm:$0xff] }
 0x9ee   :  { %v1351_v15 = vsel %vm178_vm6, %v2206_v11, 0.0 }
 0x9ef   :  { %1352 = vadd.xlane.f32.xlu0 %v1351_v15 }
 0xa05   :  { %1358 = vrot.lane.b32.xlu0 %v2356_v55, %s2257_s25  ;;  %v1544_v55 = vld [vmem:[%s2609_s3 + $0x10] sm:$0xff] }
 0xa09   :  { %1520 = vrot.lane.b32.xlu0 %v1096_v52, %s2259_s27 }
 0xa74   :  { %v1350_v13 = vpop.xlane.xlu0 %1349 }
 0xa75   :  { %2207 = vrcp.f32 %v1350_v13 }
 0xa78   :  { %v1353_v16 = vpop.xlane.xlu0 %1352 }
 0xa79   :  { %2209 = vrcp.f32 %v1353_v16 }
 0xa7c   :  { %v1359_v17 = vpop.permute.xlu0 %1358 }
 0xa7d   :  { %2087 = vmatpush3.msra.mxu0 %v1359_v17 }
 0xa80   :  { %v1521_v34 = vpop.permute.xlu0 %1520 }
 0xa81   :  { %v1537_v38 = vsel %vm1536_vm8, %v1534_v35, %v1521_v34  ;;  %v1807_v34 = vld [vmem:[%s2611_s5 + $0x78] sm:$0xff]  ;;  %v1806_v35 = vld [vmem:[%s2611_s5 + $0x70] sm:$0xff] }
 0xa82   :  { %v2208_v18 = vpop.eup %2207  ;;  %2118 = vmatprep.subr.mxu0 %v1807_v34 }
 0xa83   :  { %v1356_v19 = vmul.f32 %v2208_v18, %v2204_v53 }
 0xa85   :  { %2089 = vmatmul.mubr.msk.f32.vlgmr.msra.gmra.mxu0 %vm178_vm6, %v1356_v19 }
 0xa86   :  { %v2210_v20 = vpop.eup %2209  ;;  %2119 = vmatpush3.msra.mxu0 %v1807_v34 }
 0xa87   :  { %v1357_v21 = vmul.f32 %v2210_v20, %v2206_v11  ;;  %v1673_v20 = vsub.s32 6, %v2333_v32  ;;  %2120 = vmatprep.subr.mxu0 %v1806_v35 }
 0xa88   :  { %2121 = vmatpush3.msra.mxu0 %v1806_v35 }
 0xa89   :  { %2094 = vmatmul.mubr.msk.f32.vlgmr.msra.gmra.mxu1 %vm178_vm6, %v1357_v21  ;;  %v1681_v21 = vsub.s32 7, %v2333_v32  ;;  %2122 = vmatprep.subr.mxu0 %v1805_v36 }
 0xa8a   :  { %2097 = vmatpush3.msra.mxu1 %v1545_v22  ;;  %v1674_v22 = vrot.slane %v2339_v37, %v1673_v20  ;;  %2123 = vmatpush3.msra.mxu0 %v1805_v36 }
 0xa8b   :  { %2098 = vmatprep.subr.mxu1 %v1544_v55 }
 0xa8c   :  { %2099 = vmatpush3.msra.mxu1 %v1544_v55 }
 0xa8d   :  { %2100 = vmatprep.subr.mxu1 %v1543_v23 }
 0xa8e   :  { %2101 = vmatpush3.msra.mxu1 %v1543_v23  ;;  %v1682_v23 = vrot.slane %v2339_v37, %v1681_v21 }
 0xa8f   :  { %2102 = vmatprep.subr.mxu1 %v1542_v24 }
 0xa90   :  { %2103 = vmatpush3.msra.mxu1 %v1542_v24 }
 0xa91   :  { %2107 = vmatprep.subr.mxu1 %v1688_v4 }
 0xb45   :  { %v1430_v25 = vpop.f32.mrf.mxu0 }
 0xb46   :  { %1528 = vrot.lane.b32.xlu0 %v1430_v25, %s2260_s2 }
 0xb47   :  { %v2090_v26 = vpop.f32.mrf.mxu0 }
 0xb49   :  { %v1506_v27 = vpop.f32.mrf.mxu1 }
 0xb4a   :  { %1530 = vrot.lane.b32.xlu1 %v1506_v27, %s2260_s2 }
 0xb4b   :  { %v2095_v28 = vpop.f32.mrf.mxu1 }
 0xbb8   :  { %v1529_v39 = vpop.permute.xlu0 %1528 }
 0xbb9   :  { %v1540_v40 = vsel %vm1539_vm7, %v1537_v38, %v1529_v39  ;;  %v1804_v38 = vld [vmem:[%s2611_s5 + $0x60] sm:$0xff]  ;;  %v1803_v39 = vld [vmem:[%s2611_s5 + $0x58] sm:$0xff] }
 0xbba   :  { %2104 = vmatprep.mubr.msk.f32.mxu1 %vm32_vm0, %v1540_v40  ;;  %2124 = vmatprep.subr.mxu0 %v1804_v38  ;;  %v1802_v40 = vld [vmem:[%s2611_s5 + $0x50] sm:$0xff] }
 0xbbb   :  { %2125 = vmatpush3.msra.mxu0 %v1804_v38 }
 0xbbc   :  { %v1531_v43 = vpop.permute.xlu1 %1530  ;;  %2126 = vmatprep.subr.mxu0 %v1803_v39 }
 0xbbd   :  { %v1541_v44 = vsel %vm1539_vm7, %v1538_v42, %v1531_v43  ;;  %2127 = vmatpush3.msra.mxu0 %v1803_v39  ;;  %v1800_v42 = vld [vmem:[%s2611_s5 + $0x40] sm:$0xff]  ;;  %v1799_v43 = vld [vmem:[%s2611_s5 + $0x38] sm:$0xff] }
 0xbbe   :  { %2105 = vmatmul.mubr.msk.f32.vlgmr.msra.gmra.mxu1 %vm32_vm0, %v1541_v44  ;;  %2128 = vmatprep.subr.mxu0 %v1802_v40  ;;  %v1798_v44 = vld [vmem:[%s2611_s5 + $0x30] sm:$0xff] }
 0xbbf   :  { %2108 = vmatpush3.msra.mxu1 %v1688_v4  ;;  %2129 = vmatpush3.msra.mxu0 %v1802_v40 }
 0xbc0   :  { %2109 = vmatprep.subr.mxu1 %v1687_v5  ;;  %2130 = vmatprep.subr.mxu0 %v1801_v41 }
 0xbc1   :  { %2110 = vmatpush3.msra.mxu1 %v1687_v5  ;;  %2131 = vmatpush3.msra.mxu0 %v1801_v41 }
 0xbc2   :  { %2111 = vmatprep.subr.mxu1 %v1686_v6  ;;  %2132 = vmatprep.subr.mxu0 %v1800_v42 }
 0xbc3   :  { %2112 = vmatpush3.msra.mxu1 %v1686_v6  ;;  %2133 = vmatpush3.msra.mxu0 %v1800_v42 }
 0xbc4   :  { %2113 = vmatprep.subr.mxu1 %v1685_v7  ;;  %2134 = vmatprep.subr.mxu0 %v1799_v43 }
 0xbc5   :  { %2114 = vmatpush3.msra.mxu1 %v1685_v7  ;;  %2135 = vmatpush3.msra.mxu0 %v1799_v43 }
 0xbc6   :  { %2136 = vmatprep.subr.mxu0 %v1798_v44 }
 0xbc7   :  { %2137 = vmatpush3.msra.mxu0 %v1798_v44 }
 0xbc8   :  { %2138 = vmatprep.subr.mxu0 %v1797_v45 }
 0xbc9   :  { %2139 = vmatpush3.msra.mxu0 %v1797_v45 }
 0xc7e   :  { %v2106_v30 = vpop.f32.mrf.mxu1 }
 0xc7f   :  { %v1628_v47 = vadd.f32 %v2106_v30, %v1549_v46  ;;  %v1795_v30 = vld [vmem:[%s2611_s5 + $0x18] sm:$0xff] }
 0xc80   :  { %v1622_v48 = vpop.f32.mrf.mxu1 }
 0xc81   :  { %v2515_v50 = vadd.f32 %v1628_v47, %v2311_v1  ;;  %v1623_v51 = vadd.f32 %v1622_v48, %v1549_v46  ;;  %v1796_v46 = vld [vmem:[%s2611_s5 + $0x20] sm:$0xff]  ;;  %v1794_v47 = vld [vmem:[%s2611_s5 + $0x10] sm:$0xff]  ;;  %v1793_v48 = vld [vmem:[%s2611_s5 + $0x8] sm:$0xff] }
 0xc82   :  { %2140 = vmatprep.subr.mxu0 %v1796_v46 }
 0xc83   :  { %v2518_v52 = vadd.f32 %v1623_v51, %v2306_v0  ;;  %v1636_v33 = vsel %vm32_vm0, %v2515_v50, 0.0  ;;  %2141 = vmatpush3.msra.mxu0 %v1796_v46  ;;  %v1792_v51 = vld [vmem:[%s2611_s5] sm:$0xff]  ;;  %s2261_s5 = smov [#allocation2]  }
 0xc84   :  { %1637 = vadd.xlane.f32.xlu1 %v1636_v33  ;;  %2142 = vmatprep.subr.mxu0 %v1795_v30  ;;  %v1691_v33 = vsub.s32 2, %v2333_v32  ;;  %s1896_s20 = sshll.u32 %s2261_s5, 4  ;;  %s1897_s20 = int_to_ptr.vmem [resolvable:$true] %s1896_s20 }
 0xc85   :  { %v1633_v54 = vsel %vm32_vm0, %v2518_v52, 0.0  ;;  %2143 = vmatpush3.msra.mxu0 %v1795_v30  ;;  %s2223_s21 = scalar_lea.vmem %s1897_s20, 256  ;;  %p2228_p1 = scmp.lt.s32.totalorder %s1897_s20, %s1897_s20 }
 0xc86   :  { %1634 = vadd.xlane.f32.xlu0 %v1633_v54  ;;  %2144 = vmatprep.subr.mxu0 %v1794_v47  ;;  %v1692_v54 = vrot.slane %v2339_v37, %v1691_v33  ;;  %p2224_p0 = scmp.ne.s32.totalorder %s1897_s20, %s2223_s21  ;;  %p2229_p2 = scmp.lt.s32.totalorder %s2223_s21, %s2223_s21 }
 0xc87   :  { %2145 = vmatpush3.msra.mxu0 %v1794_v47 }
 0xc88   :  { %2146 = vmatprep.subr.mxu0 %v1793_v48  ;;  %p2230_p3 = por %p2229_p2, %p2228_p1 }
 0xc89   :  { %2147 = vmatpush3.msra.mxu0 %v1793_v48 }
 0xc8a   :  { %2148 = vmatprep.subr.mxu0 %v1792_v51  ;;  %p2231_p4 = pnand %p2230_p3, %p2224_p0 }
 0xc8b   :  { %2149 = vmatpush3.msra.mxu0 %v1792_v51 }
 0xd0d   :  { %v1638_v56 = vpop.xlane.xlu1 %1637 }
 0xd0e   :  { %v1640_v57 = vmul.f32 0.03125, %v1638_v56 }
 0xd0f   :  { %v1635_v58 = vpop.xlane.xlu0 %1634 }
 0xd10   :  { %v1639_v60 = vmul.f32 0.03125, %v1635_v58  ;;  %v1642_v61 = vsub.f32 %v2515_v50, %v1640_v57 }
 0xd12   :  { %v1641_v1 = vsub.f32 %v2518_v52, %v1639_v60  ;;  %v1644_v63 = vmul.f32 %v1642_v61, %v1642_v61  ;;  %v1676_v26 = vmul.f32 %v1674_v22, %v1642_v61 }
 0xd14   :  { %v1643_v62 = vmul.f32 %v1641_v1, %v1641_v1  ;;  %v1648_v3 = vsel %vm32_vm0, %v1644_v63, 0.0  ;;  %v1675_v55 = vmul.f32 %v1674_v22, %v1641_v1 }
 0xd16   :  { %v1645_v0 = vsel %vm32_vm0, %v1643_v62, 0.0 }
 0xd17   :  { %1646 = vadd.xlane.f32.xlu0 %v1645_v0 }
 0xd1b   :  { %1649 = vadd.xlane.f32.xlu0 %v1648_v3 }
 0xda0   :  { %v1647_v49 = vpop.xlane.xlu0 %1646 }
 0xda1   :  { %v1651_v59 = vmul.f32 0.032258064, %v1647_v49 }
 0xda3   :  { %2211 = vrsqrt.f32 %v1651_v59  ;;  %vm1655_vm9 = vcmp.eq.f32.partialorder %v1651_v59, inf  ;;  %v1658_v12 = vand.u32 2147483648, %v1651_v59  ;;  %vm1657_vm10 = vcmp.eq.f32.partialorder %v1651_v59, 0.0 }
 0xda4   :  { %v1650_v8 = vpop.xlane.xlu0 %1649 }
 0xda5   :  { %v1652_v9 = vmul.f32 0.032258064, %v1650_v8 }
 0xda7   :  { %2213 = vrsqrt.f32 %v1652_v9  ;;  %vm1662_vm11 = vcmp.eq.f32.partialorder %v1652_v9, inf  ;;  %v1665_v16 = vand.u32 2147483648, %v1652_v9  ;;  %vm1664_vm12 = vcmp.eq.f32.partialorder %v1652_v9, 0.0 }
 0xdb0   :  { %v2212_v2 = vpop.eup %2211 }
 0xdb1   :  { %v1654_v10 = vmul.f32 %v2212_v2, %v1651_v59 }
 0xdb3   :  { %v1656_v53 = vsel %vm1655_vm9, %v1651_v59, %v1654_v10 }
 0xdb4   :  { %v2214_v14 = vpop.eup %2213  ;;  %v1659_v11 = vsel %vm1657_vm10, %v1658_v12, %v1656_v53 }
 0xdb5   :  { %v1667_v15 = vadd.f32 1e-06, %v1659_v11  ;;  %v1661_v13 = vmul.f32 %v2214_v14, %v1652_v9  ;;  %v1810_v14 = vsub.s32 3, %v2333_v32 }
 0xdb7   :  { %2215 = vrcp.f32 %v1667_v15  ;;  %v1663_v17 = vsel %vm1662_vm11, %v1652_v9, %v1661_v13  ;;  %v1811_v11 = vrot.slane %v2339_v37, %v1810_v14 }
 0xdb8   :  { %v1666_v18 = vsel %vm1664_vm12, %v1665_v16, %v1663_v17 }
 0xdb9   :  { %v1668_v19 = vadd.f32 1e-06, %v1666_v18 }
 0xdbb   :  { %2217 = vrcp.f32 %v1668_v19 }
 0xdc4   :  { %v2216_v24 = vpop.eup %2215 }
 0xdc5   :  { %v1677_v25 = vmul.f32 %v2216_v24, %v1675_v55 }
 0xdc7   :  { %v1683_v27 = vadd.f32 %v1682_v23, %v1677_v25 }
 0xdc8   :  { %v2218_v28 = vpop.eup %2217 }
 0xdc9   :  { %v1678_v29 = vmul.f32 %v2218_v28, %v1676_v26  ;;  %2115 = vmatprep.mubr.msk.f32.mxu1 %vm32_vm0, %v1683_v27 }
 0xdcb   :  { %v1684_v31 = vadd.f32 %v1682_v23, %v1678_v29 }
 0xdcd   :  { %2116 = vmatmul.mubr.msk.f32.vlgmr.msra.gmra.mxu1 %vm32_vm0, %v1684_v31 }
 0xe8d   :  { %v2117_v56 = vpop.f32.mrf.mxu1 }
 0xe8e   :  { %v1771_v57 = vadd.f32 %v2117_v56, %v1692_v54 }
 0xe8f   :  { %v1765_v58 = vpop.f32.mrf.mxu1 }
 0xe90   :  { %v1777_v60 = vmul.f32 0.044715, %v1771_v57  ;;  %v1766_v61 = vadd.f32 %v1765_v58, %v1692_v54  ;;  %v1775_v10 = vmul.f32 0.5, %v1771_v57 }
 0xe92   :  { %v1779_v1 = vmul.f32 %v1777_v60, %v1771_v57  ;;  %v1776_v62 = vmul.f32 0.044715, %v1766_v61  ;;  %v1774_v9 = vmul.f32 0.5, %v1766_v61 }
 0xe94   :  { %v1781_v0 = vmul.f32 %v1779_v1, %v1771_v57  ;;  %v1778_v63 = vmul.f32 %v1776_v62, %v1766_v61 }
 0xe96   :  { %v1783_v3 = vadd.f32 %v1781_v0, %v1771_v57  ;;  %v1780_v4 = vmul.f32 %v1778_v63, %v1766_v61 }
 0xe98   :  { %v1782_v5 = vadd.f32 %v1780_v4, %v1766_v61  ;;  %v1785_v6 = vmul.f32 0.7978846, %v1783_v3 }
 0xe9a   :  { %v1784_v7 = vmul.f32 0.7978846, %v1782_v5  ;;  %2219 = vtanh.f32 %v1785_v6 }
 0xe9c   :  { %2221 = vtanh.f32 %v1784_v7 }
 0xea7   :  { %v2220_v49 = vpop.eup %2219 }
 0xea8   :  { %v1789_v8 = vadd.f32 1.0, %v2220_v49 }
 0xea9   :  { %v2222_v59 = vpop.eup %2221 }
 0xeaa   :  { %v1788_v2 = vadd.f32 1.0, %v2222_v59  ;;  %v1791_v53 = vmul.f32 %v1789_v8, %v1775_v10 }
 0xeac   :  { %v1790_v12 = vmul.f32 %v1788_v2, %v1774_v9 }
 0xeae   :  { %2150 = vmatprep.mubr.f32.mxu0 %v1790_v12 }
 0xeaf   :  { %2151 = vmatmul.mubr.f32.vlgmr.msra.gmra.mxu0 %v1791_v53 }
 0xf6f   :  { %v2152_v15 = vpop.f32.mrf.mxu0 }
 0xf70   :  { %v1884_v13 = vadd.f32 %v2152_v15, %v1811_v11 }
 0xf71   :  { %v1878_v16 = vpop.f32.mrf.mxu0 }
 0xf72   :  { %v1888_v17 = vadd.f32 %v1884_v13, %v2515_v50  ;;  %v1879_v18 = vadd.f32 %v1878_v16, %v1811_v11 }
 0xf74   :  { %1890 = vst.msk [vmem:[#allocation2 + $0x8] sm:$0xff] %vm32_vm0, %v1888_v17  ;;  %v1887_v19 = vadd.f32 %v1879_v18, %v2518_v52 }
 0xf76   :  { %1889 = vst.msk [vmem:[#allocation2] sm:$0xff] %vm32_vm0, %v1887_v19 }
 0xf77   :  { %2234 = shalt.err (!%p2231_p4)
}
 0xf78   :  { %s2262_s22 = smov 128  }
 0xf79   :  { %1902 = dma.vmem_to_hbm [thread:$0]  %s1897_s20, 256, %s2613_s7, [#allocation3], %s2262_s22, %s2262_s22, %s2258_s26  }
 0xf7a   :  { %2243 = dma.done.wait [#allocation3], 256  }
 0xf7b   :  { %2244 = vsyncadd [#allocation3], 4294967040 }
 0xf7c   :  { %1906 = vsyncpa [#allocation3], 1 }

</bundles_post_ra>
